<compile_context>
chip_gen: v5e
topology: v5e:2x2
jax: 0.10.0
libtpu: 0.0.40
codegen_flags: <defaults>
</compile_context>

<pallas_src>
import functools

import jax
import jax.numpy as jnp
from jax import lax
from jax.experimental import pallas as pl
from jax.experimental.pallas import tpu as pltpu


def _bin_fork_kernel(x1_ref, x2_ref,
                     w1_ref, b1_ref,
                     w2_ref, b2_ref,
                     w3_ref, b3_ref,
                     w4_ref, b4_ref,
                     out_ref,
                     xcat_ref, slab_ref,
                     *, h, H, W):
    """Fused forward for one image (grid is over batch).

    x1_ref / x2_ref : (1, h, H*W)        channels-first, flattened spatial
    w1_ref          : (4h, 2h)           1x1 conv
    w2_ref / w3_ref : (4h, 9*4h)         3x3 convs, taps packed along K
    w4_ref          : (h, 4h)            1x1 conv
    b*_ref          : (C, 1)
    out_ref         : (1, h, H*W)
    xcat_ref        : VMEM scratch (2h, H*W)    concatenated conv1 input
    slab_ref        : VMEM scratch (9*4h, H*W)  im2col slab for 3x3 convs
    """
    c4 = 4 * h
    hw = H * W
    f32 = jnp.float32

    # conv1 (1x1) on cat(x1, x2): a single matmul with K = 2h.
    xcat_ref[0:h, :] = x1_ref[0]
    xcat_ref[h:2 * h, :] = x2_ref[0]
    y = jnp.dot(w1_ref[...], xcat_ref[...], preferred_element_type=f32)
    y = jnp.maximum(y + b1_ref[...], 0.0)
    res = y                                                   # (4h, H*W)

    # Boundary masks for 'same' padding.  Pure compares on a lane iota — no
    # vector integer div/mod (row tests are direct comparisons on the flat
    # index; the column index uses a bitwise AND since W is a power of two).
    pos = lax.broadcasted_iota(jnp.int32, (c4, hw), 1)
    if W & (W - 1) == 0:
        col = jnp.bitwise_and(pos, W - 1)
    else:
        # TODO(synk): non-power-of-two W needs a vector int mod for the column
        # index; the demo (and typical NPI shapes) use power-of-two W.
        col = pos % W
    m_up = pos >= W                 # source row y-1 exists   (dy == -1)
    m_dn = pos < (H - 1) * W        # source row y+1 exists   (dy == +1)
    m_lf = col >= 1                 # source col x-1 exists   (dx == -1)
    m_rt = col < (W - 1)            # source col x+1 exists   (dx == +1)

    def conv3x3(src, w_ref, b_ref):
        # im2col via lane rolls: each of the 9 taps is a roll of the flattened
        # spatial axis by dy*W+dx (XLU slot) with out-of-image lanes zeroed
        # (VPU select); the taps are stacked into slab_ref and contracted in
        # ONE matmul (K = 9*4h) instead of 9 tiny K=4h matmuls.
        for kh in range(3):
            dy = kh - 1
            for kw in range(3):
                dx = kw - 1
                off = dy * W + dx
                tap = kh * 3 + kw
                if off == 0:
                    shifted = src
                else:
                    shifted = pltpu.roll(src, shift=(-off) % hw, axis=1)
                valid = None
                if dy == -1:
                    valid = m_up
                elif dy == 1:
                    valid = m_dn
                if dx == -1:
                    valid = m_lf if valid is None else valid & m_lf
                elif dx == 1:
                    valid = m_rt if valid is None else valid & m_rt
                if valid is not None:
                    shifted = jnp.where(valid, shifted, 0.0)
                slab_ref[tap * c4:(tap + 1) * c4, :] = shifted
        return jnp.dot(w_ref[...], slab_ref[...],
                       preferred_element_type=f32) + b_ref[...]

    y = jnp.maximum(conv3x3(y, w2_ref, b2_ref), 0.0)    # conv2 + relu
    y = conv3x3(y, w3_ref, b3_ref)                      # conv3
    y = jnp.maximum(y + res, 0.0)                       # residual + relu

    # conv4 (1x1)
    out_ref[0] = (jnp.dot(w4_ref[...], y, preferred_element_type=f32)
                  + b4_ref[...])


def bin_fork_large(x1_nchw, x2_nchw, params, *, h):
    """x1, x2: (N, h, H, W) float32 (PyTorch NCHW). Returns (N, h, H, W)."""
    N, hc, H, W = x1_nchw.shape
    assert hc == h
    c4 = 4 * h
    hw = H * W

    w1, b1, w2, b2, w3, b3, w4, b4 = params

    # NCHW already matches the channels-first kernel layout: just flatten the
    # spatial dims (free reshape) — no activation transposes at all.
    x1 = x1_nchw.reshape(N, h, hw).astype(jnp.float32)
    x2 = x2_nchw.reshape(N, h, hw).astype(jnp.float32)

    # Repack weights/biases for channels-first matmuls (tiny one-time XLA ops):
    #   1x1 convs : (Cin, Cout)       -> (Cout, Cin)
    #   3x3 convs : (3, 3, Cin, Cout) -> (Cout, 9*Cin)   [taps packed along K]
    #   biases    : (1, C)            -> (C, 1)
    w1m = jnp.transpose(w1, (1, 0))
    w2m = jnp.transpose(w2, (3, 0, 1, 2)).reshape(c4, 9 * c4)
    w3m = jnp.transpose(w3, (3, 0, 1, 2)).reshape(c4, 9 * c4)
    w4m = jnp.transpose(w4, (1, 0))
    b1m = b1.reshape(c4, 1)
    b2m = b2.reshape(c4, 1)
    b3m = b3.reshape(c4, 1)
    b4m = b4.reshape(h, 1)

    kern = functools.partial(_bin_fork_kernel, h=h, H=H, W=W)

    full = lambda a: pl.BlockSpec(a.shape, lambda b: (0,) * a.ndim)

    out = pl.pallas_call(
        kern,
        out_shape=jax.ShapeDtypeStruct((N, h, hw), jnp.float32),
        grid_spec=pltpu.PrefetchScalarGridSpec(
            num_scalar_prefetch=0,
            grid=(N,),
            in_specs=[
                pl.BlockSpec((1, h, hw), lambda b: (b, 0, 0)),
                pl.BlockSpec((1, h, hw), lambda b: (b, 0, 0)),
                full(w1m), full(b1m),
                full(w2m), full(b2m),
                full(w3m), full(b3m),
                full(w4m), full(b4m),
            ],
            out_specs=pl.BlockSpec((1, h, hw), lambda b: (b, 0, 0)),
            scratch_shapes=[
                pltpu.VMEM((2 * h, hw), jnp.float32),    # concatenated input
                pltpu.VMEM((9 * c4, hw), jnp.float32),   # im2col slab
            ],
        ),
        compiler_params=pltpu.CompilerParams(
            dimension_semantics=("parallel",)),
    )(x1, x2, w1m, b1m, w2m, b2m, w3m, b3m, w4m, b4m)

    return out.reshape(N, h, H, W)


def _reference(x1_nchw, x2_nchw, params, *, h):
    """Plain-JAX reference (NHWC convs) for numeric verification."""
    w1, b1, w2, b2, w3, b3, w4, b4 = params
    x1 = jnp.transpose(x1_nchw, (0, 2, 3, 1))
    x2 = jnp.transpose(x2_nchw, (0, 2, 3, 1))
    x = jnp.concatenate([x1, x2], axis=-1)

    def conv(x, w_hwio, b, pad):
        y = lax.conv_general_dilated(
            x, w_hwio, window_strides=(1, 1),
            padding=[(pad, pad), (pad, pad)],
            dimension_numbers=("NHWC", "HWIO", "NHWC"))
        return y + b.reshape(1, 1, 1, -1)

    w1h = w1.reshape(1, 1, 2 * h, 4 * h)
    w4h = w4.reshape(1, 1, 4 * h, h)
    x = jax.nn.relu(conv(x, w1h, b1, 0))
    res = x
    x = jax.nn.relu(conv(x, w2, b2, 1))
    x = conv(x, w3, b3, 1)
    x = jax.nn.relu(x + res)
    x = conv(x, w4h, b4, 0)
    return jnp.transpose(x, (0, 3, 1, 2))


def _init_params(key, h):
    c2, c4 = 2 * h, 4 * h
    ks = jax.random.split(key, 8)
    scale = 0.1
    w1 = scale * jax.random.normal(ks[0], (c2, c4), jnp.float32)
    b1 = scale * jax.random.normal(ks[1], (1, c4), jnp.float32)
    w2 = scale * jax.random.normal(ks[2], (3, 3, c4, c4), jnp.float32)
    b2 = scale * jax.random.normal(ks[3], (1, c4), jnp.float32)
    w3 = scale * jax.random.normal(ks[4], (3, 3, c4, c4), jnp.float32)
    b3 = scale * jax.random.normal(ks[5], (1, c4), jnp.float32)
    w4 = scale * jax.random.normal(ks[6], (c4, h), jnp.float32)
    b4 = scale * jax.random.normal(ks[7], (1, h), jnp.float32)
    return (w1, b1, w2, b2, w3, b3, w4, b4)


if __name__ == "__main__":
    h = 4          # hidden size -> channels: x1/x2 have h, internal 4h = 16
    N, H, W = 2, 16, 16

    key = jax.random.PRNGKey(0)
    k1, k2, kp = jax.random.split(key, 3)
    x1 = jax.random.normal(k1, (N, h, H, W), jnp.float32)   # NCHW like PyTorch
    x2 = jax.random.normal(k2, (N, h, H, W), jnp.float32)
    params = _init_params(kp, h)

    out = bin_fork_large(x1, x2, params, h=h)
    out = jax.block_until_ready(out)

    ref = jax.block_until_ready(_reference(x1, x2, params, h=h))
    assert out.shape == (N, h, H, W)
    assert jnp.max(jnp.abs(out - ref)) < 1e-3, "mismatch vs reference"

    print("KERNEL_OK")
</pallas_src>

<mosaic_0001>
module attributes {stable_mosaic.version = 11 : i64} {
  func.func @_bin_fork_kernel(%arg0: i32, %arg1: memref<1x4x256xf32, #tpu.memory_space<vmem>>, %arg2: memref<1x4x256xf32, #tpu.memory_space<vmem>>, %arg3: memref<16x8xf32, #tpu.memory_space<vmem>>, %arg4: memref<16x1xf32, #tpu.memory_space<vmem>>, %arg5: memref<16x144xf32, #tpu.memory_space<vmem>>, %arg6: memref<16x1xf32, #tpu.memory_space<vmem>>, %arg7: memref<16x144xf32, #tpu.memory_space<vmem>>, %arg8: memref<16x1xf32, #tpu.memory_space<vmem>>, %arg9: memref<4x16xf32, #tpu.memory_space<vmem>>, %arg10: memref<4x1xf32, #tpu.memory_space<vmem>>, %arg11: memref<1x4x256xf32, #tpu.memory_space<vmem>>, %arg12: memref<8x256xf32, #tpu.memory_space<vmem>>, %arg13: memref<144x256xf32, #tpu.memory_space<vmem>>) attributes {dimension_semantics = [#tpu.dimension_semantics<parallel>], iteration_bounds = array<i64: 2>, scalar_prefetch = 0 : i64, scratch_operands = 2 : i64, tpu.core_type = #tpu.core_type<tc>, window_params = [{transform_indices = @transform_0, window_bounds = array<i64: 1, 4, 256>}, {transform_indices = @transform_1, window_bounds = array<i64: 1, 4, 256>}, {pipeline_mode = #tpu.pipeline_mode<synchronous>, transform_indices = @transform_2, window_bounds = array<i64: 16, 8>}, {pipeline_mode = #tpu.pipeline_mode<synchronous>, transform_indices = @transform_3, window_bounds = array<i64: 16, 1>}, {pipeline_mode = #tpu.pipeline_mode<synchronous>, transform_indices = @transform_4, window_bounds = array<i64: 16, 144>}, {pipeline_mode = #tpu.pipeline_mode<synchronous>, transform_indices = @transform_5, window_bounds = array<i64: 16, 1>}, {pipeline_mode = #tpu.pipeline_mode<synchronous>, transform_indices = @transform_6, window_bounds = array<i64: 16, 144>}, {pipeline_mode = #tpu.pipeline_mode<synchronous>, transform_indices = @transform_7, window_bounds = array<i64: 16, 1>}, {pipeline_mode = #tpu.pipeline_mode<synchronous>, transform_indices = @transform_8, window_bounds = array<i64: 4, 16>}, {pipeline_mode = #tpu.pipeline_mode<synchronous>, transform_indices = @transform_9, window_bounds = array<i64: 4, 1>}, {transform_indices = @transform_10, window_bounds = array<i64: 1, 4, 256>}]} {
    %c0 = arith.constant 0 : index
    %c0_0 = arith.constant 0 : index
    %c0_1 = arith.constant 0 : index
    %0 = vector.load %arg1[%c0, %c0_0, %c0_1] : memref<1x4x256xf32, #tpu.memory_space<vmem>>, vector<1x4x256xf32>
    %1 = vector.shape_cast %0 : vector<1x4x256xf32> to vector<4x256xf32>
    %c0_2 = arith.constant 0 : index
    %c0_3 = arith.constant 0 : index
    %2 = vector.load %arg12[%c0_2, %c0_3] : memref<8x256xf32, #tpu.memory_space<vmem>>, vector<4x256xf32>
    tpu.vector_store %arg12[%c0_2, %c0_3], %1 {strides = array<i32>} : memref<8x256xf32, #tpu.memory_space<vmem>>, vector<4x256xf32>,
    %c0_4 = arith.constant 0 : index
    %c0_5 = arith.constant 0 : index
    %c0_6 = arith.constant 0 : index
    %3 = vector.load %arg2[%c0_4, %c0_5, %c0_6] : memref<1x4x256xf32, #tpu.memory_space<vmem>>, vector<1x4x256xf32>
    %4 = vector.shape_cast %3 : vector<1x4x256xf32> to vector<4x256xf32>
    %c4 = arith.constant 4 : index
    %c0_7 = arith.constant 0 : index
    %5 = vector.load %arg12[%c4, %c0_7] : memref<8x256xf32, #tpu.memory_space<vmem>>, vector<4x256xf32>
    tpu.vector_store %arg12[%c4, %c0_7], %4 {strides = array<i32>} : memref<8x256xf32, #tpu.memory_space<vmem>>, vector<4x256xf32>,
    %c0_8 = arith.constant 0 : index
    %c0_9 = arith.constant 0 : index
    %6 = vector.load %arg3[%c0_8, %c0_9] : memref<16x8xf32, #tpu.memory_space<vmem>>, vector<16x8xf32>
    %c0_10 = arith.constant 0 : index
    %c0_11 = arith.constant 0 : index
    %7 = vector.load %arg12[%c0_10, %c0_11] : memref<8x256xf32, #tpu.memory_space<vmem>>, vector<8x256xf32>
    %cst = arith.constant dense<0.000000e+00> : vector<16x256xf32>
    %8 = tpu.matmul %6, %7, %cst {dimension_numbers = #tpu.dot_dimension_numbers<[1], [0], [0], [1], [0, 0, 1, 1], [], []>} : vector<16x8xf32>, vector<8x256xf32>, vector<16x256xf32> -> vector<16x256xf32>
    %c0_12 = arith.constant 0 : index
    %c0_13 = arith.constant 0 : index
    %9 = vector.load %arg4[%c0_12, %c0_13] : memref<16x1xf32, #tpu.memory_space<vmem>>, vector<16x1xf32>
    %10 = vector.broadcast %9 : vector<16x1xf32> to vector<16x256xf32>
    %11 = arith.addf %8, %10 : vector<16x256xf32>
    %cst_14 = arith.constant 0.000000e+00 : f32
    %12 = vector.broadcast %cst_14 : f32 to vector<16x256xf32>
    %13 = arith.maximumf %11, %12 : vector<16x256xf32>
    %14 = tpu.iota {dimensions = array<i32: 1>} : vector<16x256xi32>
    %c15_i32 = arith.constant 15 : i32
    %15 = vector.broadcast %c15_i32 : i32 to vector<16x256xi32>
    %16 = arith.andi %14, %15 : vector<16x256xi32>
    %c16_i32 = arith.constant 16 : i32
    %17 = vector.broadcast %c16_i32 : i32 to vector<16x256xi32>
    %18 = arith.cmpi sge, %14, %17 : vector<16x256xi32>
    %c240_i32 = arith.constant 240 : i32
    %19 = vector.broadcast %c240_i32 : i32 to vector<16x256xi32>
    %20 = arith.cmpi slt, %14, %19 : vector<16x256xi32>
    %c1_i32 = arith.constant 1 : i32
    %21 = vector.broadcast %c1_i32 : i32 to vector<16x256xi32>
    %22 = arith.cmpi sge, %16, %21 : vector<16x256xi32>
    %c15_i32_15 = arith.constant 15 : i32
    %23 = vector.broadcast %c15_i32_15 : i32 to vector<16x256xi32>
    %24 = arith.cmpi slt, %16, %23 : vector<16x256xi32>
    %c17_i32 = arith.constant 17 : i32
    %25 = tpu.dynamic_rotate %13 by %c17_i32 dim 1 : vector<16x256xf32>, i32 -> vector<16x256xf32>
    %26 = arith.andi %18, %22 : vector<16x256xi1>
    %cst_16 = arith.constant 0.000000e+00 : f32
    %27 = vector.broadcast %cst_16 : f32 to vector<16x256xf32>
    %28 = arith.select %26, %25, %27 : vector<16x256xi1>, vector<16x256xf32>
    %c0_17 = arith.constant 0 : index
    %c0_18 = arith.constant 0 : index
    %29 = vector.load %arg13[%c0_17, %c0_18] : memref<144x256xf32, #tpu.memory_space<vmem>>, vector<16x256xf32>
    tpu.vector_store %arg13[%c0_17, %c0_18], %28 {strides = array<i32>} : memref<144x256xf32, #tpu.memory_space<vmem>>, vector<16x256xf32>,
    %c16_i32_19 = arith.constant 16 : i32
    %30 = tpu.dynamic_rotate %13 by %c16_i32_19 dim 1 : vector<16x256xf32>, i32 -> vector<16x256xf32>
    %cst_20 = arith.constant 0.000000e+00 : f32
    %31 = vector.broadcast %cst_20 : f32 to vector<16x256xf32>
    %32 = arith.select %18, %30, %31 : vector<16x256xi1>, vector<16x256xf32>
    %c16 = arith.constant 16 : index
    %c0_21 = arith.constant 0 : index
    %33 = vector.load %arg13[%c16, %c0_21] : memref<144x256xf32, #tpu.memory_space<vmem>>, vector<16x256xf32>
    tpu.vector_store %arg13[%c16, %c0_21], %32 {strides = array<i32>} : memref<144x256xf32, #tpu.memory_space<vmem>>, vector<16x256xf32>,
    %c15_i32_22 = arith.constant 15 : i32
    %34 = tpu.dynamic_rotate %13 by %c15_i32_22 dim 1 : vector<16x256xf32>, i32 -> vector<16x256xf32>
    %35 = arith.andi %18, %24 : vector<16x256xi1>
    %cst_23 = arith.constant 0.000000e+00 : f32
    %36 = vector.broadcast %cst_23 : f32 to vector<16x256xf32>
    %37 = arith.select %35, %34, %36 : vector<16x256xi1>, vector<16x256xf32>
    %c32 = arith.constant 32 : index
    %c0_24 = arith.constant 0 : index
    %38 = vector.load %arg13[%c32, %c0_24] : memref<144x256xf32, #tpu.memory_space<vmem>>, vector<16x256xf32>
    tpu.vector_store %arg13[%c32, %c0_24], %37 {strides = array<i32>} : memref<144x256xf32, #tpu.memory_space<vmem>>, vector<16x256xf32>,
    %c1_i32_25 = arith.constant 1 : i32
    %39 = tpu.dynamic_rotate %13 by %c1_i32_25 dim 1 : vector<16x256xf32>, i32 -> vector<16x256xf32>
    %cst_26 = arith.constant 0.000000e+00 : f32
    %40 = vector.broadcast %cst_26 : f32 to vector<16x256xf32>
    %41 = arith.select %22, %39, %40 : vector<16x256xi1>, vector<16x256xf32>
    %c48 = arith.constant 48 : index
    %c0_27 = arith.constant 0 : index
    %42 = vector.load %arg13[%c48, %c0_27] : memref<144x256xf32, #tpu.memory_space<vmem>>, vector<16x256xf32>
    tpu.vector_store %arg13[%c48, %c0_27], %41 {strides = array<i32>} : memref<144x256xf32, #tpu.memory_space<vmem>>, vector<16x256xf32>,
    %c64 = arith.constant 64 : index
    %c0_28 = arith.constant 0 : index
    %43 = vector.load %arg13[%c64, %c0_28] : memref<144x256xf32, #tpu.memory_space<vmem>>, vector<16x256xf32>
    tpu.vector_store %arg13[%c64, %c0_28], %13 {strides = array<i32>} : memref<144x256xf32, #tpu.memory_space<vmem>>, vector<16x256xf32>,
    %c255_i32 = arith.constant 255 : i32
    %44 = tpu.dynamic_rotate %13 by %c255_i32 dim 1 : vector<16x256xf32>, i32 -> vector<16x256xf32>
    %cst_29 = arith.constant 0.000000e+00 : f32
    %45 = vector.broadcast %cst_29 : f32 to vector<16x256xf32>
    %46 = arith.select %24, %44, %45 : vector<16x256xi1>, vector<16x256xf32>
    %c80 = arith.constant 80 : index
    %c0_30 = arith.constant 0 : index
    %47 = vector.load %arg13[%c80, %c0_30] : memref<144x256xf32, #tpu.memory_space<vmem>>, vector<16x256xf32>
    tpu.vector_store %arg13[%c80, %c0_30], %46 {strides = array<i32>} : memref<144x256xf32, #tpu.memory_space<vmem>>, vector<16x256xf32>,
    %c241_i32 = arith.constant 241 : i32
    %48 = tpu.dynamic_rotate %13 by %c241_i32 dim 1 : vector<16x256xf32>, i32 -> vector<16x256xf32>
    %49 = arith.andi %20, %22 : vector<16x256xi1>
    %cst_31 = arith.constant 0.000000e+00 : f32
    %50 = vector.broadcast %cst_31 : f32 to vector<16x256xf32>
    %51 = arith.select %49, %48, %50 : vector<16x256xi1>, vector<16x256xf32>
    %c96 = arith.constant 96 : index
    %c0_32 = arith.constant 0 : index
    %52 = vector.load %arg13[%c96, %c0_32] : memref<144x256xf32, #tpu.memory_space<vmem>>, vector<16x256xf32>
    tpu.vector_store %arg13[%c96, %c0_32], %51 {strides = array<i32>} : memref<144x256xf32, #tpu.memory_space<vmem>>, vector<16x256xf32>,
    %c240_i32_33 = arith.constant 240 : i32
    %53 = tpu.dynamic_rotate %13 by %c240_i32_33 dim 1 : vector<16x256xf32>, i32 -> vector<16x256xf32>
    %cst_34 = arith.constant 0.000000e+00 : f32
    %54 = vector.broadcast %cst_34 : f32 to vector<16x256xf32>
    %55 = arith.select %20, %53, %54 : vector<16x256xi1>, vector<16x256xf32>
    %c112 = arith.constant 112 : index
    %c0_35 = arith.constant 0 : index
    %56 = vector.load %arg13[%c112, %c0_35] : memref<144x256xf32, #tpu.memory_space<vmem>>, vector<16x256xf32>
    tpu.vector_store %arg13[%c112, %c0_35], %55 {strides = array<i32>} : memref<144x256xf32, #tpu.memory_space<vmem>>, vector<16x256xf32>,
    %c239_i32 = arith.constant 239 : i32
    %57 = tpu.dynamic_rotate %13 by %c239_i32 dim 1 : vector<16x256xf32>, i32 -> vector<16x256xf32>
    %58 = arith.andi %20, %24 : vector<16x256xi1>
    %cst_36 = arith.constant 0.000000e+00 : f32
    %59 = vector.broadcast %cst_36 : f32 to vector<16x256xf32>
    %60 = arith.select %58, %57, %59 : vector<16x256xi1>, vector<16x256xf32>
    %c128 = arith.constant 128 : index
    %c0_37 = arith.constant 0 : index
    %61 = vector.load %arg13[%c128, %c0_37] : memref<144x256xf32, #tpu.memory_space<vmem>>, vector<16x256xf32>
    tpu.vector_store %arg13[%c128, %c0_37], %60 {strides = array<i32>} : memref<144x256xf32, #tpu.memory_space<vmem>>, vector<16x256xf32>,
    %c0_38 = arith.constant 0 : index
    %c0_39 = arith.constant 0 : index
    %62 = vector.load %arg5[%c0_38, %c0_39] : memref<16x144xf32, #tpu.memory_space<vmem>>, vector<16x144xf32>
    %c0_40 = arith.constant 0 : index
    %c0_41 = arith.constant 0 : index
    %63 = vector.load %arg13[%c0_40, %c0_41] : memref<144x256xf32, #tpu.memory_space<vmem>>, vector<144x256xf32>
    %cst_42 = arith.constant dense<0.000000e+00> : vector<16x256xf32>
    %64 = tpu.matmul %62, %63, %cst_42 {dimension_numbers = #tpu.dot_dimension_numbers<[1], [0], [0], [1], [0, 0, 1, 1], [], []>} : vector<16x144xf32>, vector<144x256xf32>, vector<16x256xf32> -> vector<16x256xf32>
    %c0_43 = arith.constant 0 : index
    %c0_44 = arith.constant 0 : index
    %65 = vector.load %arg6[%c0_43, %c0_44] : memref<16x1xf32, #tpu.memory_space<vmem>>, vector<16x1xf32>
    %66 = vector.broadcast %65 : vector<16x1xf32> to vector<16x256xf32>
    %67 = arith.addf %64, %66 : vector<16x256xf32>
    %cst_45 = arith.constant 0.000000e+00 : f32
    %68 = vector.broadcast %cst_45 : f32 to vector<16x256xf32>
    %69 = arith.maximumf %67, %68 : vector<16x256xf32>
    %c17_i32_46 = arith.constant 17 : i32
    %70 = tpu.dynamic_rotate %69 by %c17_i32_46 dim 1 : vector<16x256xf32>, i32 -> vector<16x256xf32>
    %71 = arith.andi %18, %22 : vector<16x256xi1>
    %cst_47 = arith.constant 0.000000e+00 : f32
    %72 = vector.broadcast %cst_47 : f32 to vector<16x256xf32>
    %73 = arith.select %71, %70, %72 : vector<16x256xi1>, vector<16x256xf32>
    %c0_48 = arith.constant 0 : index
    %c0_49 = arith.constant 0 : index
    %74 = vector.load %arg13[%c0_48, %c0_49] : memref<144x256xf32, #tpu.memory_space<vmem>>, vector<16x256xf32>
    tpu.vector_store %arg13[%c0_48, %c0_49], %73 {strides = array<i32>} : memref<144x256xf32, #tpu.memory_space<vmem>>, vector<16x256xf32>,
    %c16_i32_50 = arith.constant 16 : i32
    %75 = tpu.dynamic_rotate %69 by %c16_i32_50 dim 1 : vector<16x256xf32>, i32 -> vector<16x256xf32>
    %cst_51 = arith.constant 0.000000e+00 : f32
    %76 = vector.broadcast %cst_51 : f32 to vector<16x256xf32>
    %77 = arith.select %18, %75, %76 : vector<16x256xi1>, vector<16x256xf32>
    %c16_52 = arith.constant 16 : index
    %c0_53 = arith.constant 0 : index
    %78 = vector.load %arg13[%c16_52, %c0_53] : memref<144x256xf32, #tpu.memory_space<vmem>>, vector<16x256xf32>
    tpu.vector_store %arg13[%c16_52, %c0_53], %77 {strides = array<i32>} : memref<144x256xf32, #tpu.memory_space<vmem>>, vector<16x256xf32>,
    %c15_i32_54 = arith.constant 15 : i32
    %79 = tpu.dynamic_rotate %69 by %c15_i32_54 dim 1 : vector<16x256xf32>, i32 -> vector<16x256xf32>
    %80 = arith.andi %18, %24 : vector<16x256xi1>
    %cst_55 = arith.constant 0.000000e+00 : f32
    %81 = vector.broadcast %cst_55 : f32 to vector<16x256xf32>
    %82 = arith.select %80, %79, %81 : vector<16x256xi1>, vector<16x256xf32>
    %c32_56 = arith.constant 32 : index
    %c0_57 = arith.constant 0 : index
    %83 = vector.load %arg13[%c32_56, %c0_57] : memref<144x256xf32, #tpu.memory_space<vmem>>, vector<16x256xf32>
    tpu.vector_store %arg13[%c32_56, %c0_57], %82 {strides = array<i32>} : memref<144x256xf32, #tpu.memory_space<vmem>>, vector<16x256xf32>,
    %c1_i32_58 = arith.constant 1 : i32
    %84 = tpu.dynamic_rotate %69 by %c1_i32_58 dim 1 : vector<16x256xf32>, i32 -> vector<16x256xf32>
    %cst_59 = arith.constant 0.000000e+00 : f32
    %85 = vector.broadcast %cst_59 : f32 to vector<16x256xf32>
    %86 = arith.select %22, %84, %85 : vector<16x256xi1>, vector<16x256xf32>
    %c48_60 = arith.constant 48 : index
    %c0_61 = arith.constant 0 : index
    %87 = vector.load %arg13[%c48_60, %c0_61] : memref<144x256xf32, #tpu.memory_space<vmem>>, vector<16x256xf32>
    tpu.vector_store %arg13[%c48_60, %c0_61], %86 {strides = array<i32>} : memref<144x256xf32, #tpu.memory_space<vmem>>, vector<16x256xf32>,
    %c64_62 = arith.constant 64 : index
    %c0_63 = arith.constant 0 : index
    %88 = vector.load %arg13[%c64_62, %c0_63] : memref<144x256xf32, #tpu.memory_space<vmem>>, vector<16x256xf32>
    tpu.vector_store %arg13[%c64_62, %c0_63], %69 {strides = array<i32>} : memref<144x256xf32, #tpu.memory_space<vmem>>, vector<16x256xf32>,
    %c255_i32_64 = arith.constant 255 : i32
    %89 = tpu.dynamic_rotate %69 by %c255_i32_64 dim 1 : vector<16x256xf32>, i32 -> vector<16x256xf32>
    %cst_65 = arith.constant 0.000000e+00 : f32
    %90 = vector.broadcast %cst_65 : f32 to vector<16x256xf32>
    %91 = arith.select %24, %89, %90 : vector<16x256xi1>, vector<16x256xf32>
    %c80_66 = arith.constant 80 : index
    %c0_67 = arith.constant 0 : index
    %92 = vector.load %arg13[%c80_66, %c0_67] : memref<144x256xf32, #tpu.memory_space<vmem>>, vector<16x256xf32>
    tpu.vector_store %arg13[%c80_66, %c0_67], %91 {strides = array<i32>} : memref<144x256xf32, #tpu.memory_space<vmem>>, vector<16x256xf32>,
    %c241_i32_68 = arith.constant 241 : i32
    %93 = tpu.dynamic_rotate %69 by %c241_i32_68 dim 1 : vector<16x256xf32>, i32 -> vector<16x256xf32>
    %94 = arith.andi %20, %22 : vector<16x256xi1>
    %cst_69 = arith.constant 0.000000e+00 : f32
    %95 = vector.broadcast %cst_69 : f32 to vector<16x256xf32>
    %96 = arith.select %94, %93, %95 : vector<16x256xi1>, vector<16x256xf32>
    %c96_70 = arith.constant 96 : index
    %c0_71 = arith.constant 0 : index
    %97 = vector.load %arg13[%c96_70, %c0_71] : memref<144x256xf32, #tpu.memory_space<vmem>>, vector<16x256xf32>
    tpu.vector_store %arg13[%c96_70, %c0_71], %96 {strides = array<i32>} : memref<144x256xf32, #tpu.memory_space<vmem>>, vector<16x256xf32>,
    %c240_i32_72 = arith.constant 240 : i32
    %98 = tpu.dynamic_rotate %69 by %c240_i32_72 dim 1 : vector<16x256xf32>, i32 -> vector<16x256xf32>
    %cst_73 = arith.constant 0.000000e+00 : f32
    %99 = vector.broadcast %cst_73 : f32 to vector<16x256xf32>
    %100 = arith.select %20, %98, %99 : vector<16x256xi1>, vector<16x256xf32>
    %c112_74 = arith.constant 112 : index
    %c0_75 = arith.constant 0 : index
    %101 = vector.load %arg13[%c112_74, %c0_75] : memref<144x256xf32, #tpu.memory_space<vmem>>, vector<16x256xf32>
    tpu.vector_store %arg13[%c112_74, %c0_75], %100 {strides = array<i32>} : memref<144x256xf32, #tpu.memory_space<vmem>>, vector<16x256xf32>,
    %c239_i32_76 = arith.constant 239 : i32
    %102 = tpu.dynamic_rotate %69 by %c239_i32_76 dim 1 : vector<16x256xf32>, i32 -> vector<16x256xf32>
    %103 = arith.andi %20, %24 : vector<16x256xi1>
    %cst_77 = arith.constant 0.000000e+00 : f32
    %104 = vector.broadcast %cst_77 : f32 to vector<16x256xf32>
    %105 = arith.select %103, %102, %104 : vector<16x256xi1>, vector<16x256xf32>
    %c128_78 = arith.constant 128 : index
    %c0_79 = arith.constant 0 : index
    %106 = vector.load %arg13[%c128_78, %c0_79] : memref<144x256xf32, #tpu.memory_space<vmem>>, vector<16x256xf32>
    tpu.vector_store %arg13[%c128_78, %c0_79], %105 {strides = array<i32>} : memref<144x256xf32, #tpu.memory_space<vmem>>, vector<16x256xf32>,
    %c0_80 = arith.constant 0 : index
    %c0_81 = arith.constant 0 : index
    %107 = vector.load %arg7[%c0_80, %c0_81] : memref<16x144xf32, #tpu.memory_space<vmem>>, vector<16x144xf32>
    %c0_82 = arith.constant 0 : index
    %c0_83 = arith.constant 0 : index
    %108 = vector.load %arg13[%c0_82, %c0_83] : memref<144x256xf32, #tpu.memory_space<vmem>>, vector<144x256xf32>
    %cst_84 = arith.constant dense<0.000000e+00> : vector<16x256xf32>
    %109 = tpu.matmul %107, %108, %cst_84 {dimension_numbers = #tpu.dot_dimension_numbers<[1], [0], [0], [1], [0, 0, 1, 1], [], []>} : vector<16x144xf32>, vector<144x256xf32>, vector<16x256xf32> -> vector<16x256xf32>
    %c0_85 = arith.constant 0 : index
    %c0_86 = arith.constant 0 : index
    %110 = vector.load %arg8[%c0_85, %c0_86] : memref<16x1xf32, #tpu.memory_space<vmem>>, vector<16x1xf32>
    %111 = vector.broadcast %110 : vector<16x1xf32> to vector<16x256xf32>
    %112 = arith.addf %109, %111 : vector<16x256xf32>
    %113 = arith.addf %112, %13 : vector<16x256xf32>
    %cst_87 = arith.constant 0.000000e+00 : f32
    %114 = vector.broadcast %cst_87 : f32 to vector<16x256xf32>
    %115 = arith.maximumf %113, %114 : vector<16x256xf32>
    %c0_88 = arith.constant 0 : index
    %c0_89 = arith.constant 0 : index
    %116 = vector.load %arg9[%c0_88, %c0_89] : memref<4x16xf32, #tpu.memory_space<vmem>>, vector<4x16xf32>
    %cst_90 = arith.constant dense<0.000000e+00> : vector<4x256xf32>
    %117 = tpu.matmul %116, %115, %cst_90 {dimension_numbers = #tpu.dot_dimension_numbers<[1], [0], [0], [1], [0, 0, 1, 1], [], []>} : vector<4x16xf32>, vector<16x256xf32>, vector<4x256xf32> -> vector<4x256xf32>
    %c0_91 = arith.constant 0 : index
    %c0_92 = arith.constant 0 : index
    %118 = vector.load %arg10[%c0_91, %c0_92] : memref<4x1xf32, #tpu.memory_space<vmem>>, vector<4x1xf32>
    %119 = vector.broadcast %118 : vector<4x1xf32> to vector<4x256xf32>
    %120 = arith.addf %117, %119 : vector<4x256xf32>
    %c0_93 = arith.constant 0 : index
    %c0_94 = arith.constant 0 : index
    %c0_95 = arith.constant 0 : index
    %121 = vector.load %arg11[%c0_93, %c0_94, %c0_95] : memref<1x4x256xf32, #tpu.memory_space<vmem>>, vector<1x4x256xf32>
    %122 = vector.shape_cast %121 : vector<1x4x256xf32> to vector<4x256xf32>
    %123 = vector.shape_cast %120 : vector<4x256xf32> to vector<1x4x256xf32>
    tpu.vector_store %arg11[%c0_93, %c0_94, %c0_95], %123 {strides = array<i32>} : memref<1x4x256xf32, #tpu.memory_space<vmem>>, vector<1x4x256xf32>,
    return
  }
  func.func @transform_0(%arg0: i32) -> (i32, i32, i32) {
    %c0_i32 = arith.constant 0 : i32
    %c0_i32_0 = arith.constant 0 : i32
    %c0_i32_1 = arith.constant 0 : i32
    return %arg0, %c0_i32, %c0_i32_0 : i32, i32, i32
  }
  func.func @transform_1(%arg0: i32) -> (i32, i32, i32) {
    %c0_i32 = arith.constant 0 : i32
    %c0_i32_0 = arith.constant 0 : i32
    %c0_i32_1 = arith.constant 0 : i32
    return %arg0, %c0_i32, %c0_i32_0 : i32, i32, i32
  }
  func.func @transform_2(%arg0: i32) -> (i32, i32) {
    %c0_i32 = arith.constant 0 : i32
    %c0_i32_0 = arith.constant 0 : i32
    %c0_i32_1 = arith.constant 0 : i32
    return %c0_i32, %c0_i32_0 : i32, i32
  }
  func.func @transform_3(%arg0: i32) -> (i32, i32) {
    %c0_i32 = arith.constant 0 : i32
    %c0_i32_0 = arith.constant 0 : i32
    %c0_i32_1 = arith.constant 0 : i32
    return %c0_i32, %c0_i32_0 : i32, i32
  }
  func.func @transform_4(%arg0: i32) -> (i32, i32) {
    %c0_i32 = arith.constant 0 : i32
    %c0_i32_0 = arith.constant 0 : i32
    %c0_i32_1 = arith.constant 0 : i32
    return %c0_i32, %c0_i32_0 : i32, i32
  }
  func.func @transform_5(%arg0: i32) -> (i32, i32) {
    %c0_i32 = arith.constant 0 : i32
    %c0_i32_0 = arith.constant 0 : i32
    %c0_i32_1 = arith.constant 0 : i32
    return %c0_i32, %c0_i32_0 : i32, i32
  }
  func.func @transform_6(%arg0: i32) -> (i32, i32) {
    %c0_i32 = arith.constant 0 : i32
    %c0_i32_0 = arith.constant 0 : i32
    %c0_i32_1 = arith.constant 0 : i32
    return %c0_i32, %c0_i32_0 : i32, i32
  }
  func.func @transform_7(%arg0: i32) -> (i32, i32) {
    %c0_i32 = arith.constant 0 : i32
    %c0_i32_0 = arith.constant 0 : i32
    %c0_i32_1 = arith.constant 0 : i32
    return %c0_i32, %c0_i32_0 : i32, i32
  }
  func.func @transform_8(%arg0: i32) -> (i32, i32) {
    %c0_i32 = arith.constant 0 : i32
    %c0_i32_0 = arith.constant 0 : i32
    %c0_i32_1 = arith.constant 0 : i32
    return %c0_i32, %c0_i32_0 : i32, i32
  }
  func.func @transform_9(%arg0: i32) -> (i32, i32) {
    %c0_i32 = arith.constant 0 : i32
    %c0_i32_0 = arith.constant 0 : i32
    %c0_i32_1 = arith.constant 0 : i32
    return %c0_i32, %c0_i32_0 : i32, i32
  }
  func.func @transform_10(%arg0: i32) -> (i32, i32, i32) {
    %c0_i32 = arith.constant 0 : i32
    %c0_i32_0 = arith.constant 0 : i32
    %c0_i32_1 = arith.constant 0 : i32
    return %arg0, %c0_i32, %c0_i32_0 : i32, i32, i32
  }
}

</mosaic_0001>

<bundles_post_ra>
// kernel: tpu_custom_call.1
= control target key start
LH: loop header
LB: loop body
LE: loop exit
PB: predicated region body
PF: predicated region fallthrough
CT: control target
= control target key end

     0   :  { %s2423_s0 = inlined_call_operand.hbm [shape: f32[2,4,256], index: 0, kind: input, shape index: {}]   ;;  %s2424_s1 = inlined_call_operand.hbm [shape: f32[2,4,256], index: 1, kind: input, shape index: {}]   ;;  %s2425_s2 = inlined_call_operand.vmem [shape: f32[16,8], index: 2, kind: input, shape index: {}]   ;;  %s2426_s3 = inlined_call_operand.vmem [shape: f32[16,1], index: 3, kind: input, shape index: {}]   ;;  %s2427_s4 = inlined_call_operand.vmem [shape: f32[16,144], index: 4, kind: input, shape index: {}]   ;;  %s2428_s5 = inlined_call_operand.vmem [shape: f32[16,1], index: 5, kind: input, shape index: {}]   ;;  %s2429_s6 = inlined_call_operand.vmem [shape: f32[16,144], index: 6, kind: input, shape index: {}]   ;;  %s2430_s7 = inlined_call_operand.vmem [shape: f32[16,1], index: 7, kind: input, shape index: {}]   ;;  %s2431_s8 = inlined_call_operand.vmem [shape: f32[4,16], index: 8, kind: input, shape index: {}]   ;;  %s2432_s9 = inlined_call_operand.vmem [shape: f32[4,1], index: 9, kind: input, shape index: {}]   ;;  %s2433_s10 = inlined_call_operand.hbm [shape: f32[2,4,256], index: 10, kind: output, shape index: {}]  }
   0x1   :  { %2444 = sst [smem:[#allocation19_spill]] %s2423_s0 }
   0x2   :  { %15 = vsyncpa [#allocation5], 0 }
   0x3   :  { %17 = vsyncpa [#allocation5 + $0x1], 0 }
   0x4   :  { %18 = vsyncpa [#allocation8], 0 }
   0x5   :  { %20 = vsyncpa [#allocation8 + $0x1], 0 }
   0x6   :  { %21 = vsyncpa [#allocation6], 0 }
   0x7   :  { %23 = vsyncpa [#allocation6 + $0x1], 0  ;;  %s1697_s13 = smov 0   ;;  %s1699_s14 = smov 0  }
   0x8   :  { %s1701_s15 = smov 0   ;;  %s1703_s16 = smov 0  }
   0x9 LB: > { %2445 = sst [smem:[#allocation13_spill]] %s1619_s13  ;;  %s1718_s17 = sadd.s32 4294967295, %s1631_s16   ;;  %s1631_s16 = sphi %s1703_s16, %s2488_s16   ;;  %s1627_s15 = sphi %s1701_s15, %s2490_s15   ;;  %s1623_s14 = sphi %s1699_s14, %s2492_s14   ;;  %s1619_s13 = sphi %s1697_s13, %s2491_s13  }
   0xa   : > { %2446 = sst [smem:[#allocation14_spill]] %s1627_s15  ;;  %s1347_s18 = sadd.s32 4294967294, %s1631_s16  }
   0xb   : > { %s1722_s19 = sadd.s32 1, %s1631_s16   ;;  %s36_s20 = sadd.s32 1, %s1627_s15 }
   0xc   : > { %2447 = sst [smem:[#allocation15_spill]] %s1722_s19  ;;  %s33_s21 = ssub.s32 %s1631_s16, %s1722_s19 }
   0xd   : > { %p43_p0 = scmp.ne.s32.totalorder %s1627_s15, %s1623_s14  ;;  %p34_p1 = scmp.eq.s32.totalorder %s33_s21, 0 }
   0xe   : > { %p44_p2 = scmp.eq.s32.totalorder %s1631_s16, 0  ;;  %p49_p3 = scmp.ne.s32.totalorder %s1623_s14, %s1619_s13 }
   0xf   : > { %p50_p4 = scmp.eq.s32.totalorder %s1718_s17, 0  ;;  %p267_p7 = scmp.eq.s32.totalorder %s1718_s17, 1 }
  0x10   : > { %s1734_s22 = scalar_select %p34_p1, %s1627_s15, %s36_s20  }
  0x11   : > { %p1736_p5 = por %p44_p2, %p43_p0  ;;  %p1740_p6 = por %p50_p4, %p49_p3 }
  0x12   : > { %2448 = sst [smem:[#allocation16_spill]] %s1734_s22  ;;  %p273_p8 = scmp.eq.s32.totalorder %s1347_s18, 1 }
  0x13   : > { %p1455_p10 = scmp.lt.s32.totalorder %s1631_s16, 2  ;;  %p1747_p11 = por %p267_p7, %p43_p0 }
  0x14   : > { %p1751_p12 = por %p273_p8, %p49_p3  ;;  %s1756_s27 = sand.u32 1, %s1627_s15  }
  0x15   : > { %s2451_s25 = scalar_select %p1747_p11, 1, 0 }
  0x16   : > { %s2453_s26 = scalar_select %p1751_p12, 1, 0 }
  0x17   : > { %2452 = sst [smem:[#allocation17_spill]] %s2451_s25  ;;  %s1379_s28 = sshll.u32 %s1631_s16, 3 }
  0x18   : > { %2454 = sst [smem:[#allocation18_spill]] %s2453_s26  ;;  %s1350_s29 = sshll.u32 %s1756_s27, 3 }
  0x19   : > { %s2455_s0 = sld [smem:[#allocation19_spill]]  ;;  %s321_s20 = scalar_lea.vmem [#allocation4], %s1350_s29 }
  0x1a   : > { %s330_s21 = sshll.u32 %s321_s20, 4  ;;  %p1765_p13 = pnand %p1455_p10, %p1736_p5  ;;  %s331_s21 = int_to_ptr.vmem [resolvable:$true] %s330_s21 }
  0x1b   : > { %p1356_p0 = scmp.ge.s32.totalorder %s1631_s16, 1  ;;  %p355_p1 = scmp.lt.s32.totalorder %s1631_s16, 3 }
  0x1c   : > { %s318_s15 = scalar_lea.sflag [#allocation5], %s1756_s27  ;;  %p1505_p3 = pneg %p1765_p13 }
  0x1f   : > { %s326_s12 = scalar_lea.hbm %s2455_s0, %s1379_s28  ;;  %s1508_s11 = scalar_lea.hbm %s2455_s0, 16 }
  0x20   : > { %s328_s18 = sshll.u32 %s326_s12, 4  ;;  %s329_s18 = int_to_ptr.hbm [resolvable:$true] %s328_s18 }
  0x21   : > { %s1501_s19 = sshra.s32 %s329_s18, 4  ;;  %s1502_s19 = int_to_ptr.hbm [resolvable:$true] %s1501_s19 }
  0x22   : > { %s1503_s26 = scalar_lea.hbm %s1502_s19, 8  ;;  %p1509_p5 = scmp.lt.s32.totalorder %s1502_s19, %s2455_s0 }
  0x23   : > { %p1504_p2 = scmp.ne.s32.totalorder %s1502_s19, %s1503_s26  ;;  %p1510_p8 = scmp.lt.s32.totalorder %s1508_s11, %s1503_s26 }
  0x25   : > { %p1506_p4 = pnand %p1505_p3, %p1504_p2  ;;  %p1511_p10 = por %p1510_p8, %p1509_p5 }
  0x27   : > { %p1507_p7 = pneg %p1506_p4 }
  0x29   : > { %p1512_p9 = pnand %p1511_p10, %p1507_p7 }
  0x2b   : > { %1515 = shalt.err (!%p1512_p9)
}
  0x2c   : > { %1447 = dma.hbm_to_vmem [thread:$0]  (!%p1765_p13), %s329_s18, 128, %s331_s21, %s318_s15  }
  0x2d   : > { %p1789_p2 = pnand %p1356_p0, %p355_p1  ;;  %s346_s19 = scalar_lea.hbm %s2424_s1, %s1379_s28 }
  0x2e   : > { %s348_s26 = sshll.u32 %s346_s19, 4  ;;  %s341_s11 = scalar_lea.vmem [#allocation7], %s1350_s29  ;;  %s349_s26 = int_to_ptr.hbm [resolvable:$true] %s348_s26 }
  0x2f   : > { %s350_s20 = sshll.u32 %s341_s11, 4  ;;  %s338_s0 = scalar_lea.sflag [#allocation8], %s1756_s27  ;;  %s351_s20 = int_to_ptr.vmem [resolvable:$true] %s350_s20 }
  0x30   : > { %s1531_s13 = sshra.s32 %s349_s26, 4  ;;  %s1538_s21 = scalar_lea.hbm %s2424_s1, 16  ;;  %s1532_s13 = int_to_ptr.hbm [resolvable:$true] %s1531_s13 }
  0x31   : > { %s1533_s25 = scalar_lea.hbm %s1532_s13, 8  ;;  %p1539_p4 = scmp.lt.s32.totalorder %s1532_s13, %s2424_s1 }
  0x32   : > { %p1534_p9 = scmp.ne.s32.totalorder %s1532_s13, %s1533_s25  ;;  %p1540_p7 = scmp.lt.s32.totalorder %s1538_s21, %s1533_s25 }
  0x34   : > { %p1536_p0 = pnand %p1534_p9, %p1505_p3  ;;  %p1541_p5 = por %p1540_p7, %p1539_p4 }
  0x36   : > { %p1537_p1 = pneg %p1536_p0 }
  0x38   : > { %p1542_p8 = pnand %p1541_p5, %p1537_p1 }
  0x3a   : > { %1545 = shalt.err (!%p1542_p8)
}
  0x3b   : > { %1450 = dma.hbm_to_vmem [thread:$0]  (!%p1765_p13), %s349_s26, 128, %s351_s20, %s338_s0  }
  0x3c   : > { %359 = sbr.rel (%p1789_p2) target bundleno = 1037 (0x40d), region = 60  ;;  %s1811_s27 = sand.u32 (!%p1789_p2), 1, %s1623_s14  }
  0x3d   : > { %s1814_s29 = sshll.u32 (!%p1789_p2), %s1811_s27, 3  ;;  %s362_s13 = scalar_lea.sflag (!%p1789_p2), [#allocation5], %s1811_s27 }
  0x3e   : > { %s365_s25 = scalar_lea.vmem (!%p1789_p2), [#allocation4], %s1814_s29 }
  0x41   : > { %1606 = dma.done.wait (%p1740_p6), %s362_s13, 128  }
  0x42   : > { %1608 = vsyncadd (%p1740_p6), %s362_s13, 4294967168  ;;  %s372_s0 = scalar_lea.sflag [#allocation8], %s1811_s27  ;;  %s375_s22 = scalar_lea.vmem [#allocation7], %s1814_s29 }
  0x43   : > { %1610 = dma.done.wait (%p1740_p6), %s372_s0, 128  }
  0x44   : > { %1612 = vsyncadd (%p1740_p6), %s372_s0, 4294967168  ;;  %v1633_v0 = vmov 0   ;;  %v442_v1 = vld [vmem:[%s2426_s3 + $0x8] sm:$0xff]  ;;  %v418_v2 = vld [vmem:[%s365_s25] sm:$0xff]  ;;  %vm453_vm0 = vcmask 64512   ;;  %s1634_s18 = smov 112   ;;  %v510_v40 = vlaneseq }
  0x45   : > { %1498 = vset.pattern.permute.xlu0 %v1633_v0  ;;  %1500 = vset.pattern.permute.xlu2 %v1633_v0  ;;  %420 = vst [vmem:[#allocation1] ss:$2 sm:$0xff] %v418_v2  ;;  %v441_v3 = vld [vmem:[%s2426_s3] sm:$0xff]  ;;  %v427_v4 = vld [vmem:[%s375_s22] sm:$0xff]  ;;  %s1635_s21 = smov 127   ;;  %s1636_s30 = smov 113  }
  0x46   : > { %1499 = vset.pattern.permute.xlu1 %v1633_v0  ;;  %450 = vperm.xlu0 %1498, %v442_v1   ;;  %v437_v9 = vld [vmem:[%s2425_s2] sm:$0xff]  ;;  %v438_v12 = vld [vmem:[%s2425_s2 + $0x8] sm:$0xff]  ;;  %s1637_s28 = smov 1   ;;  %s1638_s13 = smov 16   ;;  %v1928_v44 = vand.u32 127, %v510_v40  ;;  %v1025_v55 = vld [vmem:[%s2429_s6 + $0x18] sm:$0xff] }
  0x47   : > { %s1639_s25 = smov 15   ;;  %s1640_s0 = smov 17  }
  0x48   : > { %s1641_s22 = smov 111   ;;  %v1931_v45 = vadd.s32 128, %v1928_v44  ;;  %vm667_vm2 = vcmp.lt.s32.totalorder %v1928_v44, 112  ;;  %v513_v54 = vand.u32 15, %v1928_v44  ;;  %vm644_vm6 = vcmp.lt.s32.totalorder %v1928_v44, 113 }
  0x49   : > { %vm623_vm9 = vcmp.lt.s32.totalorder %v1928_v44, 127  ;;  %vm598_vm10 = vcmp.lt.s32.totalorder %v1928_v44, 1  ;;  %vm2441_vm11 = vcmp.ge.s32.totalorder %v1928_v44, 16  ;;  %vm575_vm13 = vcmp.lt.s32.totalorder %v1928_v44, 15 }
  0x4a   : > { %vm518_vm1 = vcmp.lt.s32.totalorder %v1931_v45, 240  ;;  %v514_v48 = vand.u32 15, %v1931_v45  ;;  %vm1953_vm4 = vcmp.ge.s32.totalorder %v513_v54, 1  ;;  %vm1986_vm8 = vcmp.lt.s32.totalorder %v513_v54, 15 }
  0x4b   : > { %vm2039_vm12 = vmand %vm2441_vm11, %vm1986_vm8  ;;  %vm2442_vm14 = vcmp.lt.s32.totalorder %v1928_v44, 16 }
  0x4c   : > { %v421_v5 = vld.sshfl [vmem:[#allocation1] sm:$0xff pattern:$0x75316420]  ;;  %v422_v6 = vld.sshfl [vmem:[#allocation1 + $0x8] sm:$0xff pattern:$0x75316420]  ;;  %vm2087_vm15 = vmand %vm2441_vm11, %vm1953_vm4 }
  0x4d   : > { %425 = vst [vmem:[#allocation2] sm:$0xf] %v421_v5  ;;  %vm1947_vm3 = vcmp.ge.s32.totalorder %v514_v48, 1  ;;  %vm1982_vm7 = vcmp.lt.s32.totalorder %v514_v48, 15 }
  0x4e   : > { %445 = vperm.xlu0 %1498, %v441_v3   ;;  %430 = vst [vmem:[#allocation1 + $0x1] ss:$2 sm:$0xff] %v427_v4  ;;  %vm1961_vm5 = vmand %vm518_vm1, %vm1947_vm3 }
  0x4f   : > { %426 = vst [vmem:[#allocation2 + $0x8] sm:$0xf] %v422_v6 }
  0x55   : > { %v431_v7 = vld.sshfl [vmem:[#allocation1] sm:$0xff pattern:$0x75316420]  ;;  %v432_v8 = vld.sshfl [vmem:[#allocation1 + $0x8] sm:$0xff pattern:$0x75316420] }
  0x56   : > { %435 = vst [vmem:[#allocation2] sm:$0xf0] %v431_v7 }
  0x57   : > { %436 = vst [vmem:[#allocation2 + $0x8] sm:$0xf0] %v432_v8 }
  0x5d   : > { %v439_v10 = vld [vmem:[#allocation2] sm:$0xff] }
  0x5e   : > { %475 = vmatpush.msra.mxu0 %v439_v10  ;;  %v440_v11 = vld [vmem:[#allocation2 + $0x8] sm:$0xff]  ;;  %v743_v10 = vld [vmem:[%s2428_s5] sm:$0xff] }
  0x5f   : > { %498 = vmatpush.msra.mxu1 %v440_v11  ;;  %1360 = vmatmul.msk.f32.vlgmr.msra.gmra.mxu0 %vm453_vm0, %v437_v9 }
  0x60   : > { %1362 = vmatmul.msk.f32.vlgmr.msra.gmra.mxu1 %vm453_vm0, %v437_v9  ;;  %v744_v9 = vld [vmem:[%s2428_s5 + $0x8] sm:$0xff] }
  0x67   : > { %1361 = vmatmul.msk.f32.gmra.mxu0 %vm453_vm0, %v438_v12 }
  0x68   : > { %1363 = vmatmul.msk.f32.gmra.mxu1 %vm453_vm0, %v438_v12  ;;  %vm2443_vm0 = vcmp.lt.s32.totalorder %v1928_v44, 17 }
  0xb8   : > { %v451_v13 = vpop.permute.xlu0 %450 }
  0xc0   : > { %v446_v14 = vpop.permute.xlu0 %445 }
  0xdc   : > { %v477_v15 = vpop.f32.mrf.mxu0 }
  0xdd   : > { %v478_v16 = vadd.f32 %v477_v15, %v446_v14  ;;  %v500_v17 = vpop.f32.mrf.mxu1 }
  0xde   : > { %v501_v18 = vadd.f32 %v500_v17, %v446_v14 }
  0xdf   : > { %v1840_v19 = vmax.f32 %v478_v16, 0.0 }
  0xe0   : > { %v1842_v20 = vmax.f32 %v501_v18, 0.0 }
  0xe1   : > { %659 = vrot.lane.b32.xlu2 %v1840_v19, %s1634_s18 }
  0xe2   : > { %619 = vrot.lane.b32.xlu1 %v1842_v20, %s1635_s21  ;;  %640 = vrot.lane.b32.xlu0 %v1842_v20, %s1636_s30 }
  0xe4   : > { %v480_v21 = vpop.f32.mrf.mxu0 }
  0xe5   : > { %v481_v22 = vadd.f32 %v480_v21, %v451_v13  ;;  %v503_v24 = vpop.f32.mrf.mxu1 }
  0xe6   : > { %v504_v25 = vadd.f32 %v503_v24, %v451_v13 }
  0xe7   : > { %v1868_v23 = vmax.f32 %v481_v22, 0.0 }
  0xe8   : > { %v1876_v26 = vmax.f32 %v504_v25, 0.0 }
  0xe9   : > { %663 = vrot.lane.b32.xlu2 %v1842_v20, %s1634_s18 }
  0xea   : > { %590 = vrot.lane.b32.xlu1 %v1840_v19, %s1637_s28  ;;  %615 = vrot.lane.b32.xlu0 %v1840_v19, %s1635_s21 }
  0xf1   : > { %636 = vrot.lane.b32.xlu2 %v1840_v19, %s1636_s30 }
  0xf2   : > { %550 = vrot.lane.b32.xlu1 %v1842_v20, %s1638_s13  ;;  %571 = vrot.lane.b32.xlu0 %v1842_v20, %s1639_s25 }
  0xf9   : > { %594 = vrot.lane.b32.xlu2 %v1842_v20, %s1637_s28 }
  0xfa   : > { %523 = vrot.lane.b32.xlu1 %v1840_v19, %s1640_s0  ;;  %546 = vrot.lane.b32.xlu0 %v1840_v19, %s1638_s13 }
 0x101   : > { %567 = vrot.lane.b32.xlu2 %v1840_v19, %s1639_s25 }
 0x102   : > { %661 = vrot.lane.b32.xlu1 %v1868_v23, %s1634_s18  ;;  %638 = vrot.lane.b32.xlu0 %v1868_v23, %s1636_s30 }
 0x109   : > { %527 = vrot.lane.b32.xlu2 %v1842_v20, %s1640_s0 }
 0x10a   : > { %665 = vrot.lane.b32.xlu1 %v1876_v26, %s1634_s18  ;;  %596 = vrot.lane.b32.xlu0 %v1876_v26, %s1637_s28 }
 0x111   : > { %621 = vrot.lane.b32.xlu2 %v1876_v26, %s1635_s21 }
 0x112   : > { %642 = vrot.lane.b32.xlu1 %v1876_v26, %s1636_s30  ;;  %569 = vrot.lane.b32.xlu0 %v1868_v23, %s1639_s25 }
 0x119   : > { %592 = vrot.lane.b32.xlu2 %v1868_v23, %s1637_s28 }
 0x11a   : > { %617 = vrot.lane.b32.xlu1 %v1868_v23, %s1635_s21  ;;  %529 = vrot.lane.b32.xlu0 %v1876_v26, %s1640_s0 }
 0x121   : > { %552 = vrot.lane.b32.xlu2 %v1876_v26, %s1638_s13 }
 0x122   : > { %573 = vrot.lane.b32.xlu1 %v1876_v26, %s1639_s25  ;;  %682 = vrot.lane.b32.xlu0 %v1868_v23, %s1641_s22 }
 0x129   : > { %525 = vrot.lane.b32.xlu2 %v1868_v23, %s1640_s0 }
 0x12a   : > { %548 = vrot.lane.b32.xlu1 %v1868_v23, %s1638_s13  ;;  %684 = vrot.lane.b32.xlu0 %v1842_v20, %s1641_s22 }
 0x131   : > { %680 = vrot.lane.b32.xlu2 %v1840_v19, %s1641_s22 }
 0x132   : > { %686 = vrot.lane.b32.xlu1 %v1876_v26, %s1641_s22 }
 0x139   : > { %747 = vperm.xlu2 %1500, %v743_v10  }
 0x13a   : > { %752 = vperm.xlu1 %1499, %v744_v9  }
 0x13b   : > { %v660_v27 = vpop.permute.xlu2 %659 }
 0x143   : > { %v664_v28 = vpop.permute.xlu2 %663 }
 0x144   : > { %v668_v52 = vsel %vm667_vm2, %v660_v27, %v664_v28  ;;  %v670_v53 = vsel %vm667_vm2, %v664_v28, %v660_v27 }
 0x14b   : > { %v637_v31 = vpop.permute.xlu2 %636 }
 0x153   : > { %v1914_v34 = vpop.permute.xlu2 %594 }
 0x154   : > { %v620_v29 = vpop.permute.xlu1 %619  ;;  %v641_v30 = vpop.permute.xlu0 %640 }
 0x155   : > { %v645_v62 = vsel %vm644_vm6, %v637_v31, %v641_v30  ;;  %v647_v63 = vsel %vm644_vm6, %v641_v30, %v637_v31 }
 0x15b   : > { %v1920_v37 = vpop.permute.xlu2 %567 }
 0x15c   : > { %v1912_v32 = vpop.permute.xlu1 %590  ;;  %v616_v33 = vpop.permute.xlu0 %615 }
 0x15d   : > { %v624_v6 = vsel %vm623_vm9, %v616_v33, %v620_v29  ;;  %v626_v7 = vsel %vm623_vm9, %v620_v29, %v616_v33  ;;  %v601_v15 = vsel %vm598_vm10, %v1914_v34, %v1912_v32  ;;  %v599_v16 = vsel %vm598_vm10, %v1912_v32, %v1914_v34 }
 0x163   : > { %v1926_v41 = vpop.permute.xlu2 %527 }
 0x164   : > { %v1916_v35 = vpop.permute.xlu1 %550  ;;  %v1918_v36 = vpop.permute.xlu0 %571 }
 0x165   : > { %v578_v24 = vsel %vm575_vm13, %v1918_v36, %v1920_v37  ;;  %v576_v25 = vsel %vm575_vm13, %v1920_v37, %v1918_v36  ;;  %v703_v36 = vld [vmem:[%s2427_s4] sm:$0xff] }
 0x16b   : > { %v622_v51 = vpop.permute.xlu2 %621 }
 0x16c   : > { %v1922_v38 = vpop.permute.xlu1 %523  ;;  %v1924_v39 = vpop.permute.xlu0 %546 }
 0x16d   : > { %v557_v31 = vsel %vm2442_vm14, %v1916_v35, %v1924_v39  ;;  %v555_v32 = vsel %vm2442_vm14, %v1924_v39, %v1916_v35  ;;  %v534_v37 = vsel %vm2443_vm0, %v1926_v41, %v1922_v38  ;;  %v532_v39 = vsel %vm2443_vm0, %v1922_v38, %v1926_v41 }
 0x173   : > { %v593_v0 = vpop.permute.xlu2 %592 }
 0x174   : > { %v662_v42 = vpop.permute.xlu1 %661  ;;  %v639_v43 = vpop.permute.xlu0 %638 }
 0x17b   : > { %v553_v11 = vpop.permute.xlu2 %552 }
 0x17c   : > { %v666_v46 = vpop.permute.xlu1 %665  ;;  %v597_v47 = vpop.permute.xlu0 %596 }
 0x17d   : > { %v669_v49 = vsel %vm667_vm2, %v662_v42, %v666_v46  ;;  %v671_v50 = vsel %vm667_vm2, %v666_v46, %v662_v42  ;;  %v602_v13 = vsel %vm598_vm10, %v597_v47, %v593_v0  ;;  %v600_v14 = vsel %vm598_vm10, %v593_v0, %v597_v47  ;;  %v704_v47 = vld [vmem:[%s2427_s4 + $0x8] sm:$0xff] }
 0x17e   : > { %762 = vmatpush.msra.mxu2 %v669_v49  ;;  %1396 = vmatpush.msk.msrb.mxu0 %vm518_vm1, %v671_v50  ;;  %v705_v50 = vld [vmem:[%s2427_s4 + $0x10] sm:$0xff] }
 0x180   : > { %763 = vmatpush.msra.mxu2 %v668_v52  ;;  %1397 = vmatpush.msk.msrb.mxu0 %vm518_vm1, %v670_v53 }
 0x183   : > { %v526_v27 = vpop.permute.xlu2 %525 }
 0x184   : > { %v643_v58 = vpop.permute.xlu1 %642  ;;  %v570_v61 = vpop.permute.xlu0 %569 }
 0x185   : > { %v646_v59 = vsel %vm644_vm6, %v639_v43, %v643_v58  ;;  %v648_v60 = vsel %vm644_vm6, %v643_v58, %v639_v43 }
 0x186   : > { %1382 = vmatpush.msk.msra.mxu2 %vm1953_vm4, %v646_v59  ;;  %1398 = vmatpush.msk.msrb.mxu0 %vm1961_vm5, %v648_v60 }
 0x188   : > { %1383 = vmatpush.msk.msra.mxu2 %vm1953_vm4, %v645_v62  ;;  %1399 = vmatpush.msk.msrb.mxu0 %vm1961_vm5, %v647_v63 }
 0x18b   : > { %v681_v46 = vpop.permute.xlu2 %680 }
 0x18c   : > { %v618_v3 = vpop.permute.xlu1 %617  ;;  %v530_v8 = vpop.permute.xlu0 %529 }
 0x18d   : > { %v625_v4 = vsel %vm623_vm9, %v618_v3, %v622_v51  ;;  %v627_v5 = vsel %vm623_vm9, %v622_v51, %v618_v3  ;;  %v535_v34 = vsel %vm2443_vm0, %v530_v8, %v526_v27  ;;  %v533_v35 = vsel %vm2443_vm0, %v526_v27, %v530_v8  ;;  %v706_v51 = vld [vmem:[%s2427_s4 + $0x18] sm:$0xff] }
 0x18e   : > { %1384 = vmatpush.msk.msra.mxu2 %vm1986_vm8, %v625_v4  ;;  %1400 = vmatpush.msk.msrb.mxu0 %vm1982_vm7, %v627_v5  ;;  %vm755_vm0 = vcmask 130048  }
 0x190   : > { %1385 = vmatpush.msk.msra.mxu2 %vm1986_vm8, %v624_v6  ;;  %1401 = vmatpush.msk.msrb.mxu0 %vm1982_vm7, %v626_v7 }
 0x192   : > { %768 = vmatpush.msra.mxu2 %v1868_v23  ;;  %814 = vmatpush.msrb.mxu0 %v1876_v26 }
 0x193   : > { %v748_v52 = vpop.permute.xlu2 %747 }
 0x194   : > { %v574_v12 = vpop.permute.xlu1 %573  ;;  %769 = vmatpush.msra.mxu2 %v1840_v19  ;;  %815 = vmatpush.msrb.mxu0 %v1842_v20  ;;  %v683_v22 = vpop.permute.xlu0 %682 }
 0x195   : > { %v579_v18 = vsel %vm575_vm13, %v574_v12, %v570_v61  ;;  %v577_v21 = vsel %vm575_vm13, %v570_v61, %v574_v12 }
 0x196   : > { %1386 = vmatpush.msk.msra.mxu2 %vm1953_vm4, %v602_v13  ;;  %1402 = vmatpush.msk.msrb.mxu0 %vm1947_vm3, %v600_v14 }
 0x198   : > { %1387 = vmatpush.msk.msra.mxu2 %vm1953_vm4, %v601_v15  ;;  %1403 = vmatpush.msk.msrb.mxu0 %vm1947_vm3, %v599_v16  ;;  %v1063_v15 = vld [vmem:[%s2430_s7 + $0x8] sm:$0xff]  ;;  %v1181_v16 = vld [vmem:[%s2432_s9] sm:$0xf] }
 0x19a   : > { %1388 = vmatpush.msk.msra.mxu2 %vm2039_vm12, %v579_v18  ;;  %1404 = vmatpush.msk.msrb.mxu0 %vm1982_vm7, %v577_v21  ;;  %v1062_v18 = vld [vmem:[%s2430_s7] sm:$0xff] }
 0x19c   : > { %v549_v28 = vpop.permute.xlu1 %548  ;;  %1389 = vmatpush.msk.msra.mxu2 %vm2039_vm12, %v578_v24  ;;  %1405 = vmatpush.msk.msrb.mxu0 %vm1982_vm7, %v576_v25  ;;  %v685_v42 = vpop.permute.xlu0 %684 }
 0x19d   : > { %v558_v29 = vsel %vm2442_vm14, %v553_v11, %v549_v28  ;;  %v556_v30 = vsel %vm2442_vm14, %v549_v28, %v553_v11  ;;  %vm688_vm14 = vcmp.lt.s32.totalorder %v1928_v44, 111 }
 0x19e   : > { %1390 = vmatpush.msk.msra.mxu2 %vm2441_vm11, %v558_v29  ;;  %820 = vmatpush.msrb.mxu0 %v556_v30  ;;  %v689_v48 = vsel %vm688_vm14, %v681_v46, %v685_v42  ;;  %v691_v49 = vsel %vm688_vm14, %v685_v42, %v681_v46 }
 0x1a0   : > { %1391 = vmatpush.msk.msra.mxu2 %vm2441_vm11, %v557_v31  ;;  %821 = vmatpush.msrb.mxu0 %v555_v32  ;;  %vm2117_vm11 = vmand %vm518_vm1, %vm1982_vm7 }
 0x1a2   : > { %1392 = vmatpush.msk.msra.mxu2 %vm2087_vm15, %v535_v34  ;;  %1406 = vmatpush.msk.msrb.mxu0 %vm1947_vm3, %v533_v35 }
 0x1a4   : > { %v687_v43 = vpop.permute.xlu1 %686  ;;  %1393 = vmatpush.msk.msra.mxu2 %vm2087_vm15, %v534_v37  ;;  %1407 = vmatpush.msk.msrb.mxu0 %vm1947_vm3, %v532_v39 }
 0x1a5   : > { %778 = vmatmul.f32.vlgmr.msra.gmra.mxu2 %v703_v36  ;;  %v690_v38 = vsel %vm688_vm14, %v683_v22, %v687_v43  ;;  %v692_v41 = vsel %vm688_vm14, %v687_v43, %v683_v22  ;;  %824 = vmatmul.f32.vlgmr.msrb.gmra.mxu0 %v703_v36 }
 0x1a6   : > { %1394 = vmatpush.msk.msra.mxu3 %vm1986_vm8, %v690_v38  ;;  %1408 = vmatpush.msk.msrb.mxu1 %vm2117_vm11, %v692_v41 }
 0x1a8   : > { %1395 = vmatpush.msk.msra.mxu3 %vm1986_vm8, %v689_v48  ;;  %1409 = vmatpush.msk.msrb.mxu1 %vm2117_vm11, %v691_v49 }
 0x1a9   : > { %1364 = vmatmul.msk.f32.vlgmr.msra.gmra.mxu3 %vm755_vm0, %v704_v47  ;;  %1366 = vmatmul.msk.f32.vlgmr.msrb.gmra.mxu1 %vm755_vm0, %v704_v47 }
 0x1ac   : > { %v753_v4 = vpop.permute.xlu1 %752 }
 0x1ad   : > { %781 = vmatmul.f32.gmra.mxu2 %v705_v50  ;;  %827 = vmatmul.f32.gmra.mxu0 %v705_v50 }
 0x1b1   : > { %1365 = vmatmul.msk.f32.gmra.mxu3 %vm755_vm0, %v706_v51  ;;  %1367 = vmatmul.msk.f32.gmra.mxu1 %vm755_vm0, %v706_v51 }
 0x222   : > { %v825_v53 = vpop.f32.mrf.mxu0 }
 0x223   : > { %v826_v54 = vadd.f32 %v825_v53, %v748_v52 }
 0x226   : > { %v848_v58 = vpop.f32.mrf.mxu1 }
 0x227   : > { %v849_v59 = vadd.f32 %v848_v58, %v826_v54 }
 0x228   : > { %v779_v60 = vpop.f32.mrf.mxu2 }
 0x229   : > { %v2155_v61 = vmax.f32 %v849_v59, 0.0  ;;  %v780_v62 = vadd.f32 %v779_v60, %v748_v52 }
 0x22a   : > { %v828_v5 = vpop.f32.mrf.mxu0 }
 0x22b   : > { %946 = vrot.lane.b32.xlu2 %v2155_v61, %s1635_s21  ;;  %966 = vrot.lane.b32.xlu1 %v2155_v61, %s1636_s30  ;;  %v829_v6 = vadd.f32 %v828_v5, %v753_v4 }
 0x22c   : > { %986 = vrot.lane.b32.xlu0 %v2155_v61, %s1634_s18  ;;  %v802_v63 = vpop.f32.mrf.mxu3 }
 0x22d   : > { %v803_v0 = vadd.f32 %v802_v63, %v780_v62 }
 0x22e   : > { %v851_v7 = vpop.f32.mrf.mxu1 }
 0x22f   : > { %v2163_v3 = vmax.f32 %v803_v0, 0.0  ;;  %v852_v8 = vadd.f32 %v851_v7, %v829_v6 }
 0x230   : > { %v782_v10 = vpop.f32.mrf.mxu2 }
 0x231   : > { %v2177_v9 = vmax.f32 %v852_v8, 0.0  ;;  %v783_v11 = vadd.f32 %v782_v10, %v753_v4 }
 0x233   : > { %902 = vrot.lane.b32.xlu1 %v2155_v61, %s1639_s25  ;;  %982 = vrot.lane.b32.xlu2 %v2163_v3, %s1634_s18 }
 0x234   : > { %922 = vrot.lane.b32.xlu0 %v2155_v61, %s1637_s28  ;;  %v805_v12 = vpop.f32.mrf.mxu3 }
 0x235   : > { %v806_v13 = vadd.f32 %v805_v12, %v783_v11 }
 0x237   : > { %v2191_v14 = vmax.f32 %v806_v13, 0.0 }
 0x23b   : > { %942 = vrot.lane.b32.xlu1 %v2163_v3, %s1635_s21  ;;  %918 = vrot.lane.b32.xlu2 %v2163_v3, %s1637_s28 }
 0x23c   : > { %962 = vrot.lane.b32.xlu0 %v2163_v3, %s1636_s30 }
 0x243   : > { %988 = vrot.lane.b32.xlu1 %v2177_v9, %s1634_s18  ;;  %968 = vrot.lane.b32.xlu2 %v2177_v9, %s1636_s30 }
 0x244   : > { %898 = vrot.lane.b32.xlu0 %v2163_v3, %s1639_s25 }
 0x24b   : > { %924 = vrot.lane.b32.xlu1 %v2177_v9, %s1637_s28  ;;  %904 = vrot.lane.b32.xlu2 %v2177_v9, %s1639_s25 }
 0x24c   : > { %948 = vrot.lane.b32.xlu0 %v2177_v9, %s1635_s21 }
 0x253   : > { %964 = vrot.lane.b32.xlu1 %v2191_v14, %s1636_s30  ;;  %944 = vrot.lane.b32.xlu2 %v2191_v14, %s1635_s21 }
 0x254   : > { %984 = vrot.lane.b32.xlu0 %v2191_v14, %s1634_s18  ;;  %s1381_s18 = sshll.u32 %s1718_s17, 3  ;;  %s1238_s17 = scalar_lea.sflag [#allocation6], %s1811_s27 }
 0x25b   : > { %878 = vrot.lane.b32.xlu1 %v2163_v3, %s1638_s13  ;;  %882 = vrot.lane.b32.xlu2 %v2155_v61, %s1638_s13 }
 0x25c   : > { %884 = vrot.lane.b32.xlu0 %v2177_v9, %s1638_s13 }
 0x263   : > { %900 = vrot.lane.b32.xlu1 %v2191_v14, %s1639_s25  ;;  %880 = vrot.lane.b32.xlu2 %v2191_v14, %s1638_s13  ;;  %s417_s25 = scalar_lea.vmem [#allocation9], %s1814_s29  ;;  %s1581_s29 = scalar_lea.hbm %s2433_s10, 16 }
 0x264   : > { %920 = vrot.lane.b32.xlu0 %v2191_v14, %s1637_s28  ;;  %s1249_s28 = scalar_lea.hbm %s2433_s10, %s1381_s18 }
 0x26b   : > { %864 = vrot.lane.b32.xlu1 %v2177_v9, %s1640_s0  ;;  %858 = vrot.lane.b32.xlu2 %v2163_v3, %s1640_s0 }
 0x26c   : > { %860 = vrot.lane.b32.xlu0 %v2191_v14, %s1640_s0 }
 0x273   : > { %1004 = vrot.lane.b32.xlu1 %v2191_v14, %s1641_s22  ;;  %1008 = vrot.lane.b32.xlu2 %v2177_v9, %s1641_s22 }
 0x274   : > { %862 = vrot.lane.b32.xlu0 %v2155_v61, %s1640_s0  ;;  %s1251_s0 = sshll.u32 %s417_s25, 4  ;;  %s1252_s0 = int_to_ptr.vmem [resolvable:$true] %s1251_s0 }
 0x27b   : > { %1006 = vrot.lane.b32.xlu1 %v2155_v61, %s1641_s22  ;;  %1071 = vperm.xlu2 %1500, %v1063_v15  }
 0x27c   : > { %1002 = vrot.lane.b32.xlu0 %v2163_v3, %s1641_s22  ;;  %s1253_s22 = sshll.u32 %s1249_s28, 4  ;;  %s1254_s22 = int_to_ptr.hbm [resolvable:$true] %s1253_s22 }
 0x27d   : > { %s1575_s24 = sshra.s32 %s1254_s22, 4  ;;  %s1576_s24 = int_to_ptr.hbm [resolvable:$true] %s1575_s24 }
 0x27e   : > { %s1577_s11 = scalar_lea.hbm %s1576_s24, 8  ;;  %p1582_p10 = scmp.lt.s32.totalorder %s1576_s24, %s2433_s10 }
 0x27f   : > { %p1578_p6 = scmp.ne.s32.totalorder %s1576_s24, %s1577_s11  ;;  %p1583_p2 = scmp.lt.s32.totalorder %s1581_s29, %s1577_s11 }
 0x281   : > { %p1579_p13 = pnand %p1578_p6, %p1747_p11  ;;  %p1584_p9 = por %p1583_p2, %p1582_p10 }
 0x283   : > { %1184 = vperm.xlu1 %1499, %v1181_v16   ;;  %p1580_p3 = pneg %p1579_p13 }
 0x284   : > { %1066 = vperm.xlu0 %1498, %v1062_v18  }
 0x285   : > { %v947_v21 = vpop.permute.xlu2 %946  ;;  %p1585_p0 = pnand %p1584_p9, %p1580_p3 }
 0x28d   : > { %v983_v22 = vpop.permute.xlu2 %982 }
 0x295   : > { %v919_v27 = vpop.permute.xlu2 %918 }
 0x29d   : > { %v967_v24 = vpop.permute.xlu1 %966  ;;  %v969_v30 = vpop.permute.xlu2 %968 }
 0x29e   : > { %v987_v25 = vpop.permute.xlu0 %986 }
 0x29f   : > { %v990_v48 = vsel %vm667_vm2, %v983_v22, %v987_v25  ;;  %v992_v49 = vsel %vm667_vm2, %v987_v25, %v983_v22  ;;  %v1022_v25 = vld [vmem:[%s2429_s6] sm:$0xff] }
 0x2a5   : > { %v2236_v28 = vpop.permute.xlu1 %902  ;;  %v905_v34 = vpop.permute.xlu2 %904 }
 0x2a6   : > { %v923_v29 = vpop.permute.xlu0 %922 }
 0x2a7   : > { %v928_v6 = vsel %vm598_vm10, %v923_v29, %v919_v27 }
 0x2ad   : > { %v943_v31 = vpop.permute.xlu1 %942  ;;  %v945_v37 = vpop.permute.xlu2 %944 }
 0x2ae   : > { %v963_v32 = vpop.permute.xlu0 %962  ;;  %v950_v62 = vsel %vm623_vm9, %v943_v31, %v947_v21  ;;  %v952_v57 = vsel %vm623_vm9, %v947_v21, %v943_v31  ;;  %v1024_v31 = vld [vmem:[%s2429_s6 + $0x10] sm:$0xff] }
 0x2af   : > { %v970_v53 = vsel %vm644_vm6, %v963_v32, %v967_v24  ;;  %v972_v45 = vsel %vm644_vm6, %v967_v24, %v963_v32  ;;  %v1023_v32 = vld [vmem:[%s2429_s6 + $0x8] sm:$0xff] }
 0x2b5   : > { %v989_v35 = vpop.permute.xlu1 %988  ;;  %v883_v41 = vpop.permute.xlu2 %882 }
 0x2b6   : > { %v899_v36 = vpop.permute.xlu0 %898 }
 0x2b7   : > { %v908_v56 = vsel %vm575_vm13, %v2236_v28, %v899_v36  ;;  %v906_v10 = vsel %vm575_vm13, %v899_v36, %v2236_v28 }
 0x2bd   : > { %v925_v39 = vpop.permute.xlu1 %924  ;;  %v881_v60 = vpop.permute.xlu2 %880 }
 0x2be   : > { %v949_v42 = vpop.permute.xlu0 %948 }
 0x2bf   : > { %v951_v58 = vsel %vm623_vm9, %v945_v37, %v949_v42  ;;  %v953_v59 = vsel %vm623_vm9, %v949_v42, %v945_v37 }
 0x2c5   : > { %v965_v43 = vpop.permute.xlu1 %964 }
 0x2c6   : > { %v985_v38 = vpop.permute.xlu0 %984  ;;  %v971_v50 = vsel %vm644_vm6, %v965_v43, %v969_v30  ;;  %v973_v51 = vsel %vm644_vm6, %v969_v30, %v965_v43 }
 0x2c7   : > { %v991_v46 = vsel %vm667_vm2, %v985_v38, %v989_v35  ;;  %v993_v47 = vsel %vm667_vm2, %v989_v35, %v985_v38 }
 0x2c8   : > { %1080 = vmatpush.msrb.mxu3 %v991_v46  ;;  %1424 = vmatpush.msk.msrb.mxu2 %vm518_vm1, %v993_v47 }
 0x2ca   : > { %1081 = vmatpush.msrb.mxu3 %v990_v48  ;;  %1425 = vmatpush.msk.msrb.mxu2 %vm518_vm1, %v992_v49  ;;  %vm2474_vm1 = vcmp.lt.s32.totalorder %v1928_v44, 16 }
 0x2cb   : > { %vm2475_vm2 = vmmov %vm2474_vm1 }
 0x2cc   : > { %1410 = vmatpush.msk.msrb.mxu3 %vm1953_vm4, %v971_v50  ;;  %1426 = vmatpush.msk.msrb.mxu2 %vm1961_vm5, %v973_v51  ;;  %vm2478_vm6 = vmmov %vm2474_vm1 }
 0x2cd   : > { %v879_v52 = vpop.permute.xlu1 %878 }
 0x2ce   : > { %v885_v54 = vpop.permute.xlu0 %884  ;;  %1411 = vmatpush.msk.msrb.mxu3 %vm1953_vm4, %v970_v53  ;;  %1427 = vmatpush.msk.msrb.mxu2 %vm1961_vm5, %v972_v45  ;;  %vm2477_vm5 = vmmov %vm2474_vm1  ;;  %v886_v17 = vsel %vm2478_vm6, %v879_v52, %v883_v41 }
 0x2cf   : > { %v889_v12 = vsel %vm2474_vm1, %v885_v54, %v881_v60  ;;  %v887_v13 = vsel %vm2475_vm2, %v881_v60, %v885_v54 }
 0x2d0   : > { %1412 = vmatpush.msk.msrb.mxu3 %vm1986_vm8, %v951_v58  ;;  %1428 = vmatpush.msk.msrb.mxu2 %vm1982_vm7, %v953_v59 }
 0x2d2   : > { %1413 = vmatpush.msk.msrb.mxu3 %vm1986_vm8, %v950_v62  ;;  %1429 = vmatpush.msk.msrb.mxu2 %vm1982_vm7, %v952_v57  ;;  %v1180_v57 = vld [vmem:[%s2431_s8] sm:$0xf] }
 0x2d4   : > { %1086 = vmatpush.msrb.mxu3 %v2191_v14  ;;  %1132 = vmatpush.msrb.mxu2 %v2177_v9  ;;  %v888_v14 = vsel %vm2477_vm5, %v883_v41, %v879_v52 }
 0x2d5   : > { %v901_v63 = vpop.permute.xlu1 %900 }
 0x2d6   : > { %v921_v0 = vpop.permute.xlu0 %920  ;;  %1087 = vmatpush.msrb.mxu3 %v2163_v3  ;;  %1133 = vmatpush.msrb.mxu2 %v2155_v61  ;;  %v926_v3 = vsel %vm598_vm10, %v919_v27, %v923_v29  ;;  %v859_v61 = vpop.permute.xlu2 %858  ;;  %v909_v7 = vsel %vm575_vm13, %v905_v34, %v901_v63  ;;  %v907_v8 = vsel %vm575_vm13, %v901_v63, %v905_v34 }
 0x2d7   : > { %v929_v4 = vsel %vm598_vm10, %v925_v39, %v921_v0  ;;  %v927_v5 = vsel %vm598_vm10, %v921_v0, %v925_v39 }
 0x2d8   : > { %1414 = vmatpush.msk.msrb.mxu3 %vm1953_vm4, %v929_v4  ;;  %1430 = vmatpush.msk.msrb.mxu2 %vm1947_vm3, %v927_v5 }
 0x2da   : > { %1415 = vmatpush.msk.msrb.mxu3 %vm1953_vm4, %v928_v6  ;;  %1431 = vmatpush.msk.msrb.mxu2 %vm1947_vm3, %v926_v3  ;;  %vm2476_vm4 = vcmp.ge.s32.totalorder %v1928_v44, 16 }
 0x2db   : > { %vm2479_vm9 = vmmov %vm2476_vm4 }
 0x2dc   : > { %1416 = vmatpush.msk.msrb.mxu3 %vm2039_vm12, %v909_v7  ;;  %1432 = vmatpush.msk.msrb.mxu2 %vm1982_vm7, %v907_v8 }
 0x2dd   : > { %v865_v9 = vpop.permute.xlu1 %864 }
 0x2de   : > { %v861_v11 = vpop.permute.xlu0 %860  ;;  %1417 = vmatpush.msk.msrb.mxu3 %vm2039_vm12, %v908_v56  ;;  %1433 = vmatpush.msk.msrb.mxu2 %vm1982_vm7, %v906_v10  ;;  %vm2480_vm7 = vcmp.lt.s32.totalorder %v1928_v44, 17  ;;  %v1009_v16 = vpop.permute.xlu2 %1008 }
 0x2df   : > { %v869_v1 = vsel %vm2480_vm7, %v865_v9, %v861_v11  ;;  %vm2481_vm10 = vmmov %vm2480_vm7 }
 0x2e0   : > { %1418 = vmatpush.msk.msrb.mxu3 %vm2476_vm4, %v889_v12  ;;  %1138 = vmatpush.msrb.mxu2 %v887_v13  ;;  %v867_v15 = vsel %vm2481_vm10, %v861_v11, %v865_v9  ;;  %vm2482_vm12 = vmmov %vm2480_vm7 }
 0x2e1   : > { %vm2483_vm13 = vmmov %vm2480_vm7 }
 0x2e2   : > { %1419 = vmatpush.msk.msrb.mxu3 %vm2479_vm9, %v888_v14  ;;  %1139 = vmatpush.msrb.mxu2 %v886_v17 }
 0x2e4   : > { %1420 = vmatpush.msk.msrb.mxu3 %vm2087_vm15, %v869_v1  ;;  %1434 = vmatpush.msk.msrb.mxu2 %vm1947_vm3, %v867_v15 }
 0x2e5   : > { %v1005_v18 = vpop.permute.xlu1 %1004 }
 0x2e6   : > { %v1011_v21 = vsel %vm688_vm14, %v1005_v18, %v1009_v16  ;;  %v1013_v22 = vsel %vm688_vm14, %v1009_v16, %v1005_v18  ;;  %v863_v24 = vpop.permute.xlu0 %862  ;;  %v1072_v42 = vpop.permute.xlu2 %1071 }
 0x2e7   : > { %v868_v27 = vsel %vm2482_vm12, %v863_v24, %v859_v61  ;;  %1422 = vmatpush.msk.msra.mxu1 %vm1986_vm8, %v1011_v21  ;;  %v866_v28 = vsel %vm2483_vm13, %v859_v61, %v863_v24  ;;  %1436 = vmatpush.msk.msra.mxu0 %vm2117_vm11, %v1013_v22 }
 0x2e8   : > { %1421 = vmatpush.msk.msrb.mxu3 %vm2087_vm15, %v868_v27  ;;  %1435 = vmatpush.msk.msrb.mxu2 %vm1947_vm3, %v866_v28  ;;  %vm1233_vm3 = vcmask 1043456  }
 0x2e9   : > { %1096 = vmatmul.f32.vlgmr.msrb.gmra.mxu3 %v1022_v25  ;;  %1142 = vmatmul.f32.vlgmr.msrb.gmra.mxu2 %v1022_v25 }
 0x2ed   : > { %v1007_v29 = vpop.permute.xlu1 %1006 }
 0x2ee   : > { %v1003_v30 = vpop.permute.xlu0 %1002 }
 0x2ef   : > { %v1010_v34 = vsel %vm688_vm14, %v1003_v30, %v1007_v29  ;;  %v1012_v33 = vsel %vm688_vm14, %v1007_v29, %v1003_v30 }
 0x2f0   : > { %1423 = vmatpush.msk.msra.mxu1 %vm1986_vm8, %v1010_v34  ;;  %1437 = vmatpush.msk.msra.mxu0 %vm2117_vm11, %v1012_v33 }
 0x2f1   : > { %1099 = vmatmul.f32.gmra.mxu3 %v1024_v31  ;;  %1368 = vmatmul.msk.f32.vlgmr.msra.gmra.mxu1 %vm755_vm0, %v1023_v32 }
 0x2f2   : > { %1145 = vmatmul.f32.gmra.mxu2 %v1024_v31  ;;  %1370 = vmatmul.msk.f32.vlgmr.msra.gmra.mxu0 %vm755_vm0, %v1023_v32 }
 0x2f6   : > { %v1067_v40 = vpop.permute.xlu0 %1066 }
 0x2f9   : > { %1369 = vmatmul.msk.f32.gmra.mxu1 %vm755_vm0, %v1025_v55 }
 0x2fa   : > { %1371 = vmatmul.msk.f32.gmra.mxu0 %vm755_vm0, %v1025_v55 }
 0x36c   : > { %v1097_v44 = vpop.f32.mrf.mxu3  ;;  %v1143_v2 = vpop.f32.mrf.mxu2 }
 0x36d   : > { %v1098_v37 = vadd.f32 %v1097_v44, %v1067_v40  ;;  %v1144_v39 = vadd.f32 %v1143_v2, %v1067_v40 }
 0x36e   : > { %v1120_v35 = vpop.f32.mrf.mxu1 }
 0x36f   : > { %v1166_v36 = vpop.f32.mrf.mxu0  ;;  %v1121_v38 = vadd.f32 %v1120_v35, %v1098_v37 }
 0x370   : > { %v1167_v47 = vadd.f32 %v1166_v36, %v1144_v39 }
 0x371   : > { %v1172_v53 = vadd.f32 %v1121_v38, %v1840_v19  ;;  %v1185_v19 = vpop.permute.xlu1 %1184 }
 0x372   : > { %v1173_v54 = vadd.f32 %v1167_v47, %v1842_v20 }
 0x373   : > { %v1176_v62 = vmax.f32 %v1172_v53, 0.0 }
 0x374   : > { %v1100_v43 = vpop.f32.mrf.mxu3  ;;  %v1177_v63 = vmax.f32 %v1173_v54, 0.0 }
 0x375   : > { %v1101_v41 = vadd.f32 %v1100_v43, %v1072_v42  ;;  %v1146_v46 = vpop.f32.mrf.mxu2 }
 0x376   : > { %v1147_v48 = vadd.f32 %v1146_v46, %v1072_v42  ;;  %v1123_v49 = vpop.f32.mrf.mxu1 }
 0x377   : > { %v1124_v50 = vadd.f32 %v1123_v49, %v1101_v41  ;;  %v1169_v51 = vpop.f32.mrf.mxu0 }
 0x378   : > { %v1170_v52 = vadd.f32 %v1169_v51, %v1147_v48 }
 0x379   : > { %v1174_v45 = vadd.f32 %v1124_v50, %v1868_v23 }
 0x37a   : > { %v1175_v58 = vadd.f32 %v1170_v52, %v1876_v26 }
 0x37b   : > { %v1178_v59 = vmax.f32 %v1174_v45, 0.0 }
 0x37c   : > { %v1179_v60 = vmax.f32 %v1175_v58, 0.0 }
 0x37d   : > { %1204 = vmatpush.msrb.mxu1 %v1178_v59 }
 0x37e   : > { %1224 = vmatpush.msra.mxu3 %v1179_v60 }
 0x37f   : > { %1205 = vmatpush.msrb.mxu1 %v1176_v62 }
 0x380   : > { %1225 = vmatpush.msra.mxu3 %v1177_v63  ;;  %1372 = vmatmul.msk.f32.vlgmr.msrb.gmra.mxu1 %vm755_vm0, %v1180_v57 }
 0x381   : > { %1373 = vmatmul.msk.f32.vlgmr.msra.gmra.mxu3 %vm755_vm0, %v1180_v57 }
 0x3fd   : > { %v1207_v20 = vpop.f32.mrf.mxu1 }
 0x3fe   : > { %v1208_v0 = vadd.f32 %v1207_v20, %v1185_v19 }
 0x404   : > { %v1227_v23 = vpop.f32.mrf.mxu3 }
 0x405   : > { %v1228_v26 = vadd.f32 %v1227_v23, %v1185_v19 }
 0x407   : > { %v1232_v4 = vrot.slane %v1228_v26, 4 }
 0x409   : > { %v1234_v5 = vsel %vm1233_vm3, %v1208_v0, %v1232_v4 }
 0x40a   : > { %1236 = vst [vmem:[%s417_s25] sm:$0xff] %v1234_v5 }
 0x40b   : > { %1588 = shalt.err (!%p1585_p0)
}
 0x40c   : > { %1442 = dma.vmem_to_hbm [thread:$0]  (%p1747_p11), %s1252_s0, 128, %s1254_s22, %s1238_s17  }
 0x40d PF: > { %s2485_s27 = sld [smem:[#allocation13_spill]]  ;;  %p2487_p1 = scmp.ge.s32.totalorder %s1631_s16, 2 }
 0x40f   : > { %p1452_p4 = pnand %p2487_p1, %p1751_p12 }
 0x411   : > { %p1453_p7 = pneg %p1452_p4 }
 0x413   : > { %s1265_s26 = sand.u32 1, %s2485_s27  }
 0x414   : > { %s1266_s18 = scalar_lea.sflag [#allocation6], %s1265_s26 }
 0x415   : > { %1614 = dma.done.wait (%p1453_p7), %s1266_s18, 128  }
 0x416   : > { %1616 = vsyncadd (%p1453_p7), %s1266_s18, 4294967168  ;;  %s2488_s16 = sld [smem:[#allocation15_spill]]  ;;  %s2491_s13 = smov %s1623_s14 }
 0x417   : > { %s2489_s21 = sld [smem:[#allocation14_spill]] }
 0x418   : > { %s2490_s15 = sld [smem:[#allocation16_spill]] }
 0x41c   : > { %p26_p5 = scmp.ge.s32.totalorder %s2488_s16, 4  }
 0x41d   : > { %s2492_s14 = smov %s2489_s21 }
 0x41e   :  { %28 = sbr.rel (!%p26_p5) target bundleno = 9 (0x9), region = 119 }
 0x423   :  { %1272 = vsyncpa [#allocation5], 1 }
 0x424   :  { %1274 = vsyncpa [#allocation5 + $0x1], 1 }
 0x425   :  { %1275 = vsyncpa [#allocation8], 1 }
 0x426   :  { %1277 = vsyncpa [#allocation8 + $0x1], 1 }
 0x427   :  { %1278 = vsyncpa [#allocation6], 1 }
 0x428   :  { %1280 = vsyncpa [#allocation6 + $0x1], 1 }

</bundles_post_ra>
